<compile_context>
chip_gen: v6e
topology: v6e:2x2x1
jax: 0.10.0
libtpu: 0.0.40
codegen_flags: <defaults>
</compile_context>

<pallas_src>
import math
import functools

import jax
import jax.numpy as jnp
from jax.experimental import pallas as pl
from jax.experimental.pallas import tpu as pltpu


MINUTE_SIZE = 144
WEEKDAY_SIZE = 7
COMBINED_VOCAB = WEEKDAY_SIZE + MINUTE_SIZE   # 151
ROW_TILE = 512                                # rows per grid step (multiple of 8)


def make_fixed_embedding(c_in: int, d_model: int) -> jnp.ndarray:
    """Replicates FixedEmbedding.__init__ (sin/cos interleaved table)."""
    position = jnp.arange(0, c_in, dtype=jnp.float32)[:, None]            # (c_in, 1)
    div_term = jnp.exp(
        jnp.arange(0, d_model, 2, dtype=jnp.float32)
        * -(math.log(10000.0) / d_model)
    )                                                                      # (ceil(d/2),)
    angles = position * div_term                                           # (c_in, ceil(d/2))
    w = jnp.zeros((c_in, d_model), dtype=jnp.float32)
    w = w.at[:, 0::2].set(jnp.sin(angles))
    # Guard against odd d_model (the PyTorch original would raise a shape error).
    w = w.at[:, 1::2].set(jnp.cos(angles[:, : d_model // 2]))
    return w


def temporal_embed_kernel(idx_ref, tab_ref, o_ref):
    # idx_ref: (TM, 2) int32 -- col 0 = weekday id in [0,7), col 1 = minute id + 7 in [7,151)
    # tab_ref: (151, D) f32 or bf16 (combined weekday | minute table)
    # o_ref:   (TM, D) f32
    rows = o_ref.shape[0]
    vocab = tab_ref.shape[0]

    ids = idx_ref[...]                                                     # (TM, 2)
    iota = jax.lax.broadcasted_iota(jnp.int32, (rows, vocab), 1)           # (TM, 151)

    # Two 1s per row: the weekday column and the (7 + minute) column (disjoint ranges).
    # Note: out-of-range ids produce an all-zero row (zeros out), unlike nn.Embedding
    # which would raise.
    onehot = ((iota == ids[:, 0:1]) | (iota == ids[:, 1:2])).astype(tab_ref.dtype)

    # Single MXU matmul == weekday_table[wd] + minute_table[mn], accumulated in f32.
    out = jnp.dot(onehot, tab_ref[...], preferred_element_type=jnp.float32)
    o_ref[...] = out.astype(o_ref.dtype)


def _round_up(n: int, m: int) -> int:
    return ((n + m - 1) // m) * m


@functools.partial(jax.jit, static_argnames=("d_model", "use_bf16_tables"))
def temporal_embedding(x: jnp.ndarray,
                       weekday_table: jnp.ndarray,
                       minute_table: jnp.ndarray,
                       d_model: int,
                       use_bf16_tables: bool = False) -> jnp.ndarray:
    """Forward pass of TemporalEmbedding.

    x: (B, S, n_feats) float -- feature 0 = weekday id, feature 1 = minute id.
    Returns (B, S, d_model) float32.
    """
    B, S, _ = x.shape
    rows = B * S

    # Combined table: rows [0, 7) = weekday table, rows [7, 151) = minute table.
    table = jnp.concatenate([weekday_table, minute_table], axis=0)         # (151, D)
    if use_bf16_tables:
        table = table.astype(jnp.bfloat16)

    # PyTorch `.long()` truncates; keep truncation for parity with the module.
    wd = x[:, :, 0].astype(jnp.int32).reshape(rows)
    mn = x[:, :, 1].astype(jnp.int32).reshape(rows) + WEEKDAY_SIZE
    idx = jnp.stack([wd, mn], axis=-1)                                     # (rows, 2) int32

    # Row tiling: multiple of 8, capped at ROW_TILE; pad rows to a multiple of tm so
    # every grid step is full.  When rows already divides evenly no pad / no slice.
    tm = min(ROW_TILE, _round_up(rows, 8))
    rows_p = _round_up(rows, tm)
    pad = rows_p - rows
    if pad:
        idx = jnp.pad(idx, ((0, pad), (0, 0)))

    grid = (rows_p // tm,)

    out = pl.pallas_call(
        temporal_embed_kernel,
        out_shape=jax.ShapeDtypeStruct((rows_p, d_model), jnp.float32),
        grid_spec=pltpu.PrefetchScalarGridSpec(
            num_scalar_prefetch=0,
            grid=grid,
            in_specs=[
                pl.BlockSpec((tm, 2), lambda i: (i, 0)),                   # merged ids
                pl.BlockSpec((COMBINED_VOCAB, d_model), lambda i: (0, 0)), # combined table
            ],
            out_specs=pl.BlockSpec((tm, d_model), lambda i: (i, 0)),
        ),
        compiler_params=pltpu.CompilerParams(
            dimension_semantics=("parallel",)),                            # megacore on v7x
    )(idx, table)

    if pad:
        out = out[:rows]
    return out.reshape(B, S, d_model)


if __name__ == "__main__":
    D_MODEL = 128    # multiple of 128 -> lane-dense output stores
    N_FEATS = 4

    weekday_table = make_fixed_embedding(WEEKDAY_SIZE, D_MODEL)
    minute_table = make_fixed_embedding(MINUTE_SIZE, D_MODEL)

    def make_inputs(key, B, S):
        k_wd, k_min, k_rest = jax.random.split(key, 3)
        weekday = jax.random.randint(k_wd, (B, S), 0, WEEKDAY_SIZE)
        minute = jax.random.randint(k_min, (B, S), 0, MINUTE_SIZE)
        rest = jax.random.normal(k_rest, (B, S, N_FEATS - 2), dtype=jnp.float32)
        x = jnp.concatenate(
            [weekday[..., None].astype(jnp.float32),
             minute[..., None].astype(jnp.float32),
             rest], axis=-1)                                               # (B, S, n_feats)
        return x, weekday, minute

    k1, k2 = jax.random.split(jax.random.PRNGKey(0), 2)

    # Case 1: tiny shapes (single tile, no padding, no slice).
    x1, wd1, mn1 = make_inputs(k1, 2, 8)
    out1 = jax.block_until_ready(
        temporal_embedding(x1, weekday_table, minute_table, D_MODEL))
    ref1 = minute_table[mn1] + weekday_table[wd1]
    assert out1.shape == (2, 8, D_MODEL)
    assert jnp.allclose(out1, ref1, atol=1e-5, rtol=1e-5)

    # Case 2: multi-step grid with row padding (rows=1600 -> tm=512, grid=(4,)).
    x2, wd2, mn2 = make_inputs(k2, 4, 400)
    out2 = jax.block_until_ready(
        temporal_embedding(x2, weekday_table, minute_table, D_MODEL))
    ref2 = minute_table[mn2] + weekday_table[wd2]
    assert out2.shape == (4, 400, D_MODEL)
    assert jnp.allclose(out2, ref2, atol=1e-5, rtol=1e-5)

    # Case 3: bf16 table path (faster single-pass MXU; ~1e-3 relative table rounding).
    out3 = jax.block_until_ready(
        temporal_embedding(x2, weekday_table, minute_table, D_MODEL,
                           use_bf16_tables=True))
    assert jnp.allclose(out3, ref2, atol=2e-2, rtol=2e-2)

    print("KERNEL_OK")
</pallas_src>

<mosaic_0001>
module attributes {stable_mosaic.version = 11 : i64} {
  func.func @temporal_embed_kernel(%arg0: i32, %arg1: memref<16x2xi32, #tpu.memory_space<vmem>>, %arg2: memref<151x128xf32, #tpu.memory_space<vmem>>, %arg3: memref<16x128xf32, #tpu.memory_space<vmem>>) attributes {dimension_semantics = [#tpu.dimension_semantics<parallel>], iteration_bounds = array<i64: 1>, scalar_prefetch = 0 : i64, scratch_operands = 0 : i64, tpu.core_type = #tpu.core_type<tc>, window_params = [{transform_indices = @transform_0, window_bounds = array<i64: 16, 2>}, {pipeline_mode = #tpu.pipeline_mode<synchronous>, transform_indices = @transform_1, window_bounds = array<i64: 151, 128>}, {transform_indices = @transform_2, window_bounds = array<i64: 16, 128>}]} {
    %c0 = arith.constant 0 : index
    %c0_0 = arith.constant 0 : index
    %0 = vector.load %arg1[%c0, %c0_0] : memref<16x2xi32, #tpu.memory_space<vmem>>, vector<16x2xi32>
    %1 = tpu.iota {dimensions = array<i32: 1>} : vector<16x151xi32>
    %2 = vector.extract_strided_slice %0 {offsets = [0, 0], sizes = [16, 1], strides = [1, 1]} : vector<16x2xi32> to vector<16x1xi32>
    %3 = vector.broadcast %2 : vector<16x1xi32> to vector<16x151xi32>
    %4 = arith.cmpi eq, %1, %3 : vector<16x151xi32>
    %5 = vector.extract_strided_slice %0 {offsets = [0, 1], sizes = [16, 1], strides = [1, 1]} : vector<16x2xi32> to vector<16x1xi32>
    %6 = vector.broadcast %5 : vector<16x1xi32> to vector<16x151xi32>
    %7 = arith.cmpi eq, %1, %6 : vector<16x151xi32>
    %8 = arith.ori %4, %7 : vector<16x151xi1>
    %9 = arith.extui %8 : vector<16x151xi1> to vector<16x151xi32>
    %10 = arith.sitofp %9 : vector<16x151xi32> to vector<16x151xf32>
    %c0_1 = arith.constant 0 : index
    %c0_2 = arith.constant 0 : index
    %11 = vector.load %arg2[%c0_1, %c0_2] : memref<151x128xf32, #tpu.memory_space<vmem>>, vector<151x128xf32>
    %cst = arith.constant dense<0.000000e+00> : vector<16x128xf32>
    %12 = tpu.matmul %10, %11, %cst {dimension_numbers = #tpu.dot_dimension_numbers<[1], [0], [0], [1], [0, 0, 1, 1], [], []>} : vector<16x151xf32>, vector<151x128xf32>, vector<16x128xf32> -> vector<16x128xf32>
    %c0_3 = arith.constant 0 : index
    %c0_4 = arith.constant 0 : index
    %13 = vector.load %arg3[%c0_3, %c0_4] : memref<16x128xf32, #tpu.memory_space<vmem>>, vector<16x128xf32>
    tpu.vector_store %arg3[%c0_3, %c0_4], %12 {strides = array<i32>} : memref<16x128xf32, #tpu.memory_space<vmem>>, vector<16x128xf32>,
    return
  }
  func.func @transform_0(%arg0: i32) -> (i32, i32) {
    %c0_i32 = arith.constant 0 : i32
    %c0_i32_0 = arith.constant 0 : i32
    return %arg0, %c0_i32 : i32, i32
  }
  func.func @transform_1(%arg0: i32) -> (i32, i32) {
    %c0_i32 = arith.constant 0 : i32
    %c0_i32_0 = arith.constant 0 : i32
    %c0_i32_1 = arith.constant 0 : i32
    return %c0_i32, %c0_i32_0 : i32, i32
  }
  func.func @transform_2(%arg0: i32) -> (i32, i32) {
    %c0_i32 = arith.constant 0 : i32
    %c0_i32_0 = arith.constant 0 : i32
    return %arg0, %c0_i32 : i32, i32
  }
}

</mosaic_0001>

<bundles_post_ra>
// kernel: temporal_embedding.1
= control target key start
LH: loop header
LB: loop body
LE: loop exit
PB: predicated region body
PF: predicated region fallthrough
CT: control target
= control target key end

     0   :  { %v251_v1 = vmov 1   ;;  %v252_v2 = vmov 0   ;;  %v253_v5 = vmov 0.0   ;;  %s383_s0 = inlined_call_operand.vmem [shape: s32[16,2], index: 0, kind: input, shape index: {}]   ;;  %s384_s1 = inlined_call_operand.vmem [shape: f32[151,128], index: 1, kind: input, shape index: {}]   ;;  %s385_s2 = inlined_call_operand.hbm [shape: f32[16,128], index: 2, kind: output, shape index: {}]  }
   0x1   :  { %v12_v0 = vld [vmem:[%s383_s0] sm:$0xff]  ;;  %227 = vset.pattern.permute.xlu1 %v251_v1  ;;  %226 = vset.pattern.permute.xlu0 %v252_v2  ;;  %v64_v3 = vld [vmem:[%s384_s1 + $0x78] sm:$0xff]  ;;  %v13_v4 = vld [vmem:[%s383_s0 + $0x8] sm:$0xff] }
   0x2   :  { %28 = vperm.xlu1 %227, %v12_v0   ;;  %18 = vperm.xlu0 %226, %v12_v0   ;;  %v63_v6 = vld [vmem:[%s384_s1 + $0x70] sm:$0xff]  ;;  %v62_v7 = vld [vmem:[%s384_s1 + $0x68] sm:$0xff] }
   0x3   :  { %79 = vmatprep.subr.mxu0 %v253_v5  ;;  %181 = vmatprep.subr.mxu1 %v253_v5 }
   0x4   :  { %80 = vmatpush1.msra.mxu0 %v64_v3  ;;  %200 = vmatpush1.msra.mxu1 %v64_v3 }
   0x5   :  { %81 = vmatprep.subr.mxu0 %v253_v5  ;;  %182 = vmatprep.subr.mxu1 %v253_v5 }
   0x6   :  { %31 = vperm.xlu1 %227, %v13_v4   ;;  %21 = vperm.xlu0 %226, %v13_v4  }
   0x7   :  { %82 = vmatpush1.msra.mxu0 %v63_v6  ;;  %201 = vmatpush1.msra.mxu1 %v63_v6 }
   0x8   :  { %7 = vsyncpa [#allocation3], 0  ;;  %83 = vmatprep.subr.mxu0 %v253_v5  ;;  %v61_v8 = vld [vmem:[%s384_s1 + $0x60] sm:$0xff]  ;;  %183 = vmatprep.subr.mxu1 %v253_v5  ;;  %v60_v9 = vld [vmem:[%s384_s1 + $0x58] sm:$0xff]  ;;  %vm75_vm0 = vcmask 1046528   ;;  %v14_v24 = vlaneseq  ;;  %vm68_vm5 = vcmask 187392  }
   0x9   :  { %84 = vmatpush1.msra.mxu0 %v62_v7  ;;  %202 = vmatpush1.msra.mxu1 %v62_v7  ;;  %v59_v10 = vld [vmem:[%s384_s1 + $0x50] sm:$0xff]  ;;  %v58_v11 = vld [vmem:[%s384_s1 + $0x48] sm:$0xff]  ;;  %v57_v12 = vld [vmem:[%s384_s1 + $0x40] sm:$0xff]  ;;  %v254_v32 = vmov 1.0  }
   0xa   :  { %85 = vmatprep.subr.mxu0 %v253_v5  ;;  %184 = vmatprep.subr.mxu1 %v253_v5  ;;  %v56_v13 = vld [vmem:[%s384_s1 + $0x38] sm:$0xff]  ;;  %v55_v14 = vld [vmem:[%s384_s1 + $0x30] sm:$0xff]  ;;  %v54_v15 = vld [vmem:[%s384_s1 + $0x28] sm:$0xff]  ;;  %v15_v25 = vand.u32 127, %v14_v24 }
   0xb   :  { %86 = vmatpush1.msra.mxu0 %v61_v8  ;;  %203 = vmatpush1.msra.mxu1 %v61_v8  ;;  %v53_v16 = vld [vmem:[%s384_s1 + $0x20] sm:$0xff]  ;;  %v52_v17 = vld [vmem:[%s384_s1 + $0x18] sm:$0xff]  ;;  %v51_v18 = vld [vmem:[%s384_s1 + $0x10] sm:$0xff] }
   0xc   :  { %87 = vmatprep.subr.mxu0 %v253_v5  ;;  %185 = vmatprep.subr.mxu1 %v253_v5  ;;  %v50_v19 = vld [vmem:[%s384_s1 + $0x8] sm:$0xff]  ;;  %v49_v20 = vld [vmem:[%s384_s1] sm:$0xff]  ;;  %v67_v21 = vld [vmem:[%s384_s1 + $0x90] sm:$0x7f]  ;;  %v16_v26 = vadd.s32 128, %v15_v25 }
   0xd   :  { %88 = vmatpush1.msra.mxu0 %v60_v9  ;;  %204 = vmatpush1.msra.mxu1 %v60_v9  ;;  %v66_v22 = vld [vmem:[%s384_s1 + $0x88] sm:$0xff]  ;;  %v65_v23 = vld [vmem:[%s384_s1 + $0x80] sm:$0xff]  ;;  %s255_s1 = smov [#allocation2]  }
   0xe   :  { %89 = vmatprep.subr.mxu0 %v253_v5  ;;  %186 = vmatprep.subr.mxu1 %v253_v5  ;;  %s161_s21 = sshll.u32 %s255_s1, 4  ;;  %s162_s21 = int_to_ptr.vmem [resolvable:$true] %s161_s21 }
   0xf   :  { %90 = vmatpush1.msra.mxu0 %v59_v10  ;;  %205 = vmatpush1.msra.mxu1 %v59_v10  ;;  %s229_s22 = scalar_lea.vmem %s162_s21, 256  ;;  %p234_p1 = scmp.lt.s32.totalorder %s162_s21, %s162_s21 }
  0x10   :  { %91 = vmatprep.subr.mxu0 %v253_v5  ;;  %187 = vmatprep.subr.mxu1 %v253_v5  ;;  %p230_p0 = scmp.ne.s32.totalorder %s162_s21, %s229_s22  ;;  %p235_p2 = scmp.lt.s32.totalorder %s229_s22, %s229_s22 }
  0x11   :  { %92 = vmatpush1.msra.mxu0 %v58_v11  ;;  %206 = vmatpush1.msra.mxu1 %v58_v11 }
  0x12   :  { %93 = vmatprep.subr.mxu0 %v253_v5  ;;  %188 = vmatprep.subr.mxu1 %v253_v5  ;;  %p236_p3 = por %p235_p2, %p234_p1 }
  0x13   :  { %94 = vmatpush1.msra.mxu0 %v57_v12  ;;  %207 = vmatpush1.msra.mxu1 %v57_v12 }
  0x14   :  { %95 = vmatprep.subr.mxu0 %v253_v5  ;;  %189 = vmatprep.subr.mxu1 %v253_v5  ;;  %p237_p4 = pnand %p236_p3, %p230_p0 }
  0x15   :  { %96 = vmatpush1.msra.mxu0 %v56_v13  ;;  %208 = vmatpush1.msra.mxu1 %v56_v13 }
  0x16   :  { %97 = vmatprep.subr.mxu0 %v253_v5  ;;  %190 = vmatprep.subr.mxu1 %v253_v5 }
  0x17   :  { %98 = vmatpush1.msra.mxu0 %v55_v14  ;;  %209 = vmatpush1.msra.mxu1 %v55_v14 }
  0x18   :  { %99 = vmatprep.subr.mxu0 %v253_v5  ;;  %191 = vmatprep.subr.mxu1 %v253_v5 }
  0x19   :  { %100 = vmatpush1.msra.mxu0 %v54_v15  ;;  %210 = vmatpush1.msra.mxu1 %v54_v15 }
  0x1a   :  { %101 = vmatprep.subr.mxu0 %v253_v5  ;;  %192 = vmatprep.subr.mxu1 %v253_v5 }
  0x1b   :  { %102 = vmatpush1.msra.mxu0 %v53_v16  ;;  %211 = vmatpush1.msra.mxu1 %v53_v16 }
  0x1c   :  { %103 = vmatprep.subr.mxu0 %v253_v5  ;;  %193 = vmatprep.subr.mxu1 %v253_v5 }
  0x1d   :  { %104 = vmatpush1.msra.mxu0 %v52_v17  ;;  %212 = vmatpush1.msra.mxu1 %v52_v17 }
  0x1e   :  { %105 = vmatprep.subr.mxu0 %v253_v5  ;;  %194 = vmatprep.subr.mxu1 %v253_v5 }
  0x1f   :  { %106 = vmatpush1.msra.mxu0 %v51_v18  ;;  %213 = vmatpush1.msra.mxu1 %v51_v18 }
  0x20   :  { %107 = vmatprep.subr.mxu0 %v253_v5  ;;  %195 = vmatprep.subr.mxu1 %v253_v5 }
  0x21   :  { %108 = vmatpush1.msra.mxu0 %v50_v19  ;;  %214 = vmatpush1.msra.mxu1 %v50_v19 }
  0x22   :  { %109 = vmatprep.subr.mxu0 %v253_v5  ;;  %196 = vmatprep.subr.mxu1 %v253_v5 }
  0x23   :  { %110 = vmatpush1.msra.mxu0 %v49_v20  ;;  %215 = vmatpush1.msra.mxu1 %v49_v20 }
  0x24   :  { %137 = vmatprep.subr.mxu0 %v253_v5  ;;  %197 = vmatprep.subr.mxu1 %v253_v5 }
  0x25   :  { %176 = vmatpush2.msk.msra.mxu0 %vm75_vm0, %v67_v21  ;;  %216 = vmatpush2.msk.msra.mxu1 %vm75_vm0, %v67_v21 }
  0x26   :  { %139 = vmatprep.subr.mxu0 %v253_v5  ;;  %198 = vmatprep.subr.mxu1 %v253_v5 }
  0x27   :  { %140 = vmatpush2.msra.mxu0 %v66_v22  ;;  %217 = vmatpush2.msra.mxu1 %v66_v22 }
  0x28   :  { %141 = vmatprep.subr.mxu0 %v253_v5  ;;  %199 = vmatprep.subr.mxu1 %v253_v5 }
  0x29   :  { %142 = vmatpush2.msra.mxu0 %v65_v23  ;;  %218 = vmatpush2.msra.mxu1 %v65_v23 }
  0x2a   :  { %228 = vset.pattern.permute.xlu0 %v251_v1 }
  0x7d   :  { %v29_v27 = vpop.permute.xlu1 %28  ;;  %v19_v28 = vpop.permute.xlu0 %18 }
  0x7e   :  { %vm34_vm1 = vcmp.eq.s32.totalorder %v16_v26, %v29_v27  ;;  %vm24_vm2 = vcmp.eq.s32.totalorder %v16_v26, %v19_v28  ;;  %vm33_vm3 = vcmp.eq.s32.totalorder %v15_v25, %v29_v27  ;;  %vm23_vm4 = vcmp.eq.s32.totalorder %v15_v25, %v19_v28 }
  0x7f   :  { %vm38_vm6 = vmor %vm24_vm2, %vm34_vm1 }
  0x80   :  { %v173_v30 = vsel %vm38_vm6, 1.0, %v253_v5  ;;  %vm37_vm7 = vmor %vm23_vm4, %vm33_vm3 }
  0x81   :  { %v32_v29 = vpop.permute.xlu1 %31  ;;  %v22_v31 = vpop.permute.xlu0 %21  ;;  %177 = vmatprep.mubr.msk.f32.mxu0 %vm68_vm5, %v173_v30 }
  0x82   :  { %vm36_vm8 = vcmp.eq.s32.totalorder %v16_v26, %v32_v29  ;;  %vm26_vm9 = vcmp.eq.s32.totalorder %v16_v26, %v22_v31  ;;  %vm35_vm10 = vcmp.eq.s32.totalorder %v15_v25, %v32_v29  ;;  %vm25_vm11 = vcmp.eq.s32.totalorder %v15_v25, %v22_v31  ;;  %178 = vmatmul.mubr.msk.f32.vlgmr.msra.gmra.mxu0 %vm37_vm7, %v254_v32 }
  0x83   :  { %vm40_vm12 = vmor %vm26_vm9, %vm36_vm8 }
  0x84   :  { %v175_v33 = vsel %vm40_vm12, 1.0, %v253_v5  ;;  %vm39_vm13 = vmor %vm25_vm11, %vm35_vm10 }
  0x85   :  { %179 = vmatprep.mubr.msk.f32.mxu1 %vm68_vm5, %v175_v33 }
  0x86   :  { %180 = vmatmul.mubr.msk.f32.vlgmr.msra.gmra.mxu1 %vm39_vm13, %v254_v32 }
 0x142   :  { %v145_v34 = vpop.f32.mrf.mxu0 }
 0x143   :  { %154 = vst [vmem:[#allocation2] sm:$0xff] %v145_v34 }
 0x144   :  { %v147_v35 = vpop.f32.mrf.mxu0 }
 0x146   :  { %v150_v36 = vpop.f32.mrf.mxu1 }
 0x147   :  { %155 = vst [vmem:[#allocation2 + $0x8] sm:$0xff] %v150_v36 }
 0x148   :  { %v152_v37 = vpop.f32.mrf.mxu1 }
 0x149   :  { %240 = shalt.err (!%p237_p4)
}
 0x14a   :  { %s256_s23 = smov 128   ;;  %s257_s24 = smov 8  }
 0x14b   :  { %167 = dma.vmem_to_hbm [thread:$0]  %s162_s21, 256, %s385_s2, [#allocation3], %s256_s23, %s256_s23, %s257_s24  }
 0x14c   :  { %249 = dma.done.wait [#allocation3], 256  }
 0x14d   :  { %250 = vsyncadd [#allocation3], 4294967040 }
 0x14e   :  { %171 = vsyncpa [#allocation3], 1 }

</bundles_post_ra>
